<compile_context>
chip_gen: v7x
topology: tpu7x:2x2x1
jax: 0.10.0
libtpu: 0.0.40
codegen_flags: <defaults>
</compile_context>

<pallas_src>
import math

import jax
import jax.numpy as jnp
from jax import lax
from jax.experimental import pallas as pl
from jax.experimental.pallas import tpu as pltpu


def _semgconv_kernel(adj_ref, wcat_ref, bias_ref, x_ref, out_ref):
    # adj_ref:  (J, J)         raw masked adjacency logits   (grid-invariant)
    # wcat_ref: (Cin, 2*Cout)  [W0 | W1] fused                (grid-invariant)
    # bias_ref: (1, 1, Cout)                                  (grid-invariant)
    # x_ref:    (TB, J, Cin)   batch tile
    # out_ref:  (TB, J, Cout)
    tb, j, cin = x_ref.shape
    cout = out_ref.shape[-1]

    # ---- adjacency prep fused in-kernel (EUP/XLU slots, free next to MXU) --
    logits = adj_ref[...]
    m = jnp.max(logits, axis=1, keepdims=True)
    e = jnp.exp(logits - m)                       # -9e15 logits underflow to 0
    sm = e / jnp.sum(e, axis=1, keepdims=True)    # row softmax
    row = lax.broadcasted_iota(jnp.int32, (j, j), 0)
    col = lax.broadcasted_iota(jnp.int32, (j, j), 1)
    diag = row == col
    a_off = jnp.where(diag, jnp.float32(0.0), sm)                       # (J, J)
    d = jnp.sum(jnp.where(diag, sm, jnp.float32(0.0)), axis=1,
                keepdims=True)                                          # (J, 1)

    # ---- feature matmul: one fused MXU contraction for both weight banks ---
    # (TB, J, Cin) -> (TB*J, Cin): leading-dim merge, layout-preserving.
    x_flat = x_ref[...].reshape(tb * j, cin)
    h = jnp.dot(x_flat, wcat_ref[...], preferred_element_type=jnp.float32)
    h0 = h[:, :cout].reshape(tb, j, cout)         # x @ W0
    h1 = h[:, cout:].reshape(tb, j, cout)         # x @ W1

    # ---- neighbor aggregation: batched (J,J)@(J,Cout), no kron zero-FLOPs --
    a_b = jnp.broadcast_to(a_off, (tb, j, j))
    off = jnp.einsum('bjk,bkc->bjc', a_b, h1,
                     preferred_element_type=jnp.float32)

    # ---- self term is a per-row VPU scale; single fully-formed store -------
    out_ref[...] = d[None, :, :] * h0 + off + bias_ref[...]


def _pick_batch_tile(B, J, target_rows=512):
    """Largest divisor of B such that TB*J stays around the MXU-friendly
    row count (>=256-512 rows/step amortizes per-step overhead)."""
    cap = max(1, target_rows // max(J, 1))
    if B <= cap:
        return B
    for tb in range(min(cap, B), 0, -1):
        if B % tb == 0:
            return tb
    return B


@jax.jit
def sem_graph_conv(x, adj_masked, W, bias):
    """x: (B, J, Cin) f32; adj_masked: (J, J) logits (-9e15 off-edge, e on-edge);
    W: (2, Cin, Cout) f32; bias: (Cout,) f32. Returns (B, J, Cout) f32."""
    B, J, Cin = x.shape
    Cout = W.shape[-1]
    TB = _pick_batch_tile(B, J)
    n_steps = B // TB

    w_cat = jnp.concatenate([W[0], W[1]], axis=1)     # (Cin, 2*Cout)
    b3d = bias.reshape(1, 1, Cout)
    adj = adj_masked.astype(jnp.float32)

    # Advisory cost estimate so XLA can place/overlap the custom call.
    flops = 2 * B * J * Cin * (2 * Cout) + 2 * B * J * J * Cout + 4 * B * J * Cout
    transcendentals = n_steps * J * J
    bytes_accessed = 4 * (x.size + B * J * Cout
                          + n_steps * (adj.size + w_cat.size + b3d.size))

    grid_spec = pltpu.PrefetchScalarGridSpec(
        num_scalar_prefetch=0,
        grid=(n_steps,),
        in_specs=[
            pl.BlockSpec((J, J), lambda i: (0, 0)),             # adj   (resident)
            pl.BlockSpec((Cin, 2 * Cout), lambda i: (0, 0)),    # w_cat (resident)
            pl.BlockSpec((1, 1, Cout), lambda i: (0, 0, 0)),    # bias  (resident)
            pl.BlockSpec((TB, J, Cin), lambda i: (i, 0, 0)),    # x batch tile
        ],
        out_specs=pl.BlockSpec((TB, J, Cout), lambda i: (i, 0, 0)),
    )

    return pl.pallas_call(
        _semgconv_kernel,
        out_shape=jax.ShapeDtypeStruct((B, J, Cout), jnp.float32),
        grid_spec=grid_spec,
        compiler_params=pltpu.CompilerParams(
            dimension_semantics=("parallel",)),   # multi-step grids shard across TCs (v7x)
        cost_estimate=pl.CostEstimate(
            flops=int(flops),
            transcendentals=int(transcendentals),
            bytes_accessed=int(bytes_accessed)),
    )(adj, w_cat, b3d, x)


def _reference(x, adj_masked, W, bias):
    h0 = jnp.matmul(x, W[0])
    h1 = jnp.matmul(x, W[1])
    sm = jax.nn.softmax(adj_masked, axis=1)
    J = sm.shape[0]
    M = jnp.eye(J, dtype=jnp.float32)
    out = jnp.matmul(sm * M, h0) + jnp.matmul(sm * (1.0 - M), h1)
    return out + bias.reshape(1, 1, -1)


if __name__ == "__main__":
    # Small shapes consistent with the module: batch=2, J=8 graph nodes,
    # in_features=4, out_features=32.
    B, J, Cin, Cout = 2, 8, 4, 32

    key = jax.random.PRNGKey(0)
    kx, kw, kb = jax.random.split(key, 3)

    # Deterministic synthetic adjacency: chain graph + self-loops.
    adj = (jnp.eye(J, dtype=jnp.float32)
           + jnp.eye(J, k=1, dtype=jnp.float32)
           + jnp.eye(J, k=-1, dtype=jnp.float32))
    mask = adj > 0

    # Parameters initialized like the PyTorch module (deterministic, in-script).
    gain = 1.414
    bound_w = gain * math.sqrt(6.0 / (Cin + Cout))      # xavier_uniform_
    W = jax.random.uniform(kw, (2, Cin, Cout), jnp.float32, -bound_w, bound_w)
    stdv = 1.0 / math.sqrt(Cout)
    bias = jax.random.uniform(kb, (Cout,), jnp.float32, -stdv, stdv)

    # Masked adjacency logits: -9e15 everywhere, e (constant-init = 1) on edges.
    adj_masked = jnp.where(mask, jnp.float32(1.0), jnp.float32(-9e15))

    x = jax.random.normal(kx, (B, J, Cin), jnp.float32)

    out = jax.block_until_ready(sem_graph_conv(x, adj_masked, W, bias))
    ref = _reference(x, adj_masked, W, bias)

    assert out.shape == (B, J, Cout)
    assert jnp.allclose(out, ref, atol=1e-5, rtol=1e-5)

    print("KERNEL_OK")
</pallas_src>

<mosaic_0001>
module attributes {stable_mosaic.version = 11 : i64} {
  func.func @_semgconv_kernel(%arg0: i32, %arg1: memref<8x8xf32, #tpu.memory_space<vmem>>, %arg2: memref<4x64xf32, #tpu.memory_space<vmem>>, %arg3: memref<1x1x32xf32, #tpu.memory_space<vmem>>, %arg4: memref<2x8x4xf32, #tpu.memory_space<vmem>>, %arg5: memref<2x8x32xf32, #tpu.memory_space<vmem>>) attributes {dimension_semantics = [#tpu.dimension_semantics<parallel>], iteration_bounds = array<i64: 1>, scalar_prefetch = 0 : i64, scratch_operands = 0 : i64, tpu.core_type = #tpu.core_type<tc>, window_params = [{pipeline_mode = #tpu.pipeline_mode<synchronous>, transform_indices = @transform_0, window_bounds = array<i64: 8, 8>}, {pipeline_mode = #tpu.pipeline_mode<synchronous>, transform_indices = @transform_1, window_bounds = array<i64: 4, 64>}, {pipeline_mode = #tpu.pipeline_mode<synchronous>, transform_indices = @transform_2, window_bounds = array<i64: 1, 1, 32>}, {transform_indices = @transform_3, window_bounds = array<i64: 2, 8, 4>}, {transform_indices = @transform_4, window_bounds = array<i64: 2, 8, 32>}]} {
    %c0 = arith.constant 0 : index
    %c0_0 = arith.constant 0 : index
    %0 = vector.load %arg1[%c0, %c0_0] : memref<8x8xf32, #tpu.memory_space<vmem>>, vector<8x8xf32>
    %cst = arith.constant dense<0xFF800000> : vector<8xf32>
    %1 = vector.multi_reduction <maximumf>, %0, %cst [1] : vector<8x8xf32> to vector<8xf32>
    %2 = vector.shape_cast %1 : vector<8xf32> to vector<8x1xf32>
    %3 = vector.broadcast %2 : vector<8x1xf32> to vector<8x8xf32>
    %4 = arith.subf %0, %3 : vector<8x8xf32>
    %5 = math.exp %4 : vector<8x8xf32>
    %cst_1 = arith.constant dense<0.000000e+00> : vector<8xf32>
    %6 = vector.multi_reduction <add>, %5, %cst_1 [1] : vector<8x8xf32> to vector<8xf32>
    %7 = vector.shape_cast %6 : vector<8xf32> to vector<8x1xf32>
    %8 = vector.broadcast %7 : vector<8x1xf32> to vector<8x8xf32>
    %9 = arith.divf %5, %8 : vector<8x8xf32>
    %10 = tpu.iota {dimensions = array<i32: 0>} : vector<8x8xi32>
    %11 = tpu.iota {dimensions = array<i32: 1>} : vector<8x8xi32>
    %12 = arith.cmpi eq, %10, %11 : vector<8x8xi32>
    %cst_2 = arith.constant 0.000000e+00 : f32
    %13 = vector.broadcast %cst_2 : f32 to vector<8x8xf32>
    %14 = arith.select %12, %13, %9 : vector<8x8xi1>, vector<8x8xf32>
    %cst_3 = arith.constant 0.000000e+00 : f32
    %15 = vector.broadcast %cst_3 : f32 to vector<8x8xf32>
    %16 = arith.select %12, %9, %15 : vector<8x8xi1>, vector<8x8xf32>
    %cst_4 = arith.constant dense<0.000000e+00> : vector<8xf32>
    %17 = vector.multi_reduction <add>, %16, %cst_4 [1] : vector<8x8xf32> to vector<8xf32>
    %18 = vector.shape_cast %17 : vector<8xf32> to vector<8x1xf32>
    %c0_5 = arith.constant 0 : index
    %c0_6 = arith.constant 0 : index
    %c0_7 = arith.constant 0 : index
    %19 = vector.load %arg4[%c0_5, %c0_6, %c0_7] : memref<2x8x4xf32, #tpu.memory_space<vmem>>, vector<2x8x4xf32>
    %20 = vector.shape_cast %19 : vector<2x8x4xf32> to vector<16x4xf32>
    %c0_8 = arith.constant 0 : index
    %c0_9 = arith.constant 0 : index
    %21 = vector.load %arg2[%c0_8, %c0_9] : memref<4x64xf32, #tpu.memory_space<vmem>>, vector<4x64xf32>
    %cst_10 = arith.constant dense<0.000000e+00> : vector<16x64xf32>
    %22 = tpu.matmul %20, %21, %cst_10 {dimension_numbers = #tpu.dot_dimension_numbers<[1], [0], [0], [1], [0, 0, 1, 1], [], []>} : vector<16x4xf32>, vector<4x64xf32>, vector<16x64xf32> -> vector<16x64xf32>
    %23 = vector.extract_strided_slice %22 {offsets = [0, 0], sizes = [16, 32], strides = [1, 1]} : vector<16x64xf32> to vector<16x32xf32>
    %24 = vector.shape_cast %23 : vector<16x32xf32> to vector<2x8x32xf32>
    %25 = vector.extract_strided_slice %22 {offsets = [0, 32], sizes = [16, 32], strides = [1, 1]} : vector<16x64xf32> to vector<16x32xf32>
    %26 = vector.shape_cast %25 : vector<16x32xf32> to vector<2x8x32xf32>
    %27 = vector.shape_cast %14 : vector<8x8xf32> to vector<1x8x8xf32>
    %28 = vector.broadcast %27 : vector<1x8x8xf32> to vector<2x8x8xf32>
    "tpu.trace_start"() <{level = 10 : i32, message = "bjk,bkc->bjc"}> : () -> ()
    %cst_11 = arith.constant dense<0.000000e+00> : vector<2x8x32xf32>
    %29 = tpu.matmul %28, %26, %cst_11 {dimension_numbers = #tpu.dot_dimension_numbers<[2], [1], [1], [2], [0, 0, 0, 1, 1, 2], [0], [0]>} : vector<2x8x8xf32>, vector<2x8x32xf32>, vector<2x8x32xf32> -> vector<2x8x32xf32>
    "tpu.trace_stop"() : () -> ()
    %30 = vector.shape_cast %18 : vector<8x1xf32> to vector<1x8x1xf32>
    %31 = vector.broadcast %30 : vector<1x8x1xf32> to vector<2x8x32xf32>
    %32 = arith.mulf %31, %24 : vector<2x8x32xf32>
    %33 = arith.addf %32, %29 : vector<2x8x32xf32>
    %c0_12 = arith.constant 0 : index
    %c0_13 = arith.constant 0 : index
    %c0_14 = arith.constant 0 : index
    %34 = vector.load %arg3[%c0_12, %c0_13, %c0_14] : memref<1x1x32xf32, #tpu.memory_space<vmem>>, vector<1x1x32xf32>
    %35 = vector.broadcast %34 : vector<1x1x32xf32> to vector<2x8x32xf32>
    %36 = arith.addf %33, %35 : vector<2x8x32xf32>
    %c0_15 = arith.constant 0 : index
    %c0_16 = arith.constant 0 : index
    %c0_17 = arith.constant 0 : index
    %37 = vector.load %arg5[%c0_15, %c0_16, %c0_17] : memref<2x8x32xf32, #tpu.memory_space<vmem>>, vector<2x8x32xf32>
    tpu.vector_store %arg5[%c0_15, %c0_16, %c0_17], %36 {strides = array<i32>} : memref<2x8x32xf32, #tpu.memory_space<vmem>>, vector<2x8x32xf32>,
    return
  }
  func.func @transform_0(%arg0: i32) -> (i32, i32) {
    %c0_i32 = arith.constant 0 : i32
    %c0_i32_0 = arith.constant 0 : i32
    %c0_i32_1 = arith.constant 0 : i32
    return %c0_i32, %c0_i32_0 : i32, i32
  }
  func.func @transform_1(%arg0: i32) -> (i32, i32) {
    %c0_i32 = arith.constant 0 : i32
    %c0_i32_0 = arith.constant 0 : i32
    %c0_i32_1 = arith.constant 0 : i32
    return %c0_i32, %c0_i32_0 : i32, i32
  }
  func.func @transform_2(%arg0: i32) -> (i32, i32, i32) {
    %c0_i32 = arith.constant 0 : i32
    %c0_i32_0 = arith.constant 0 : i32
    %c0_i32_1 = arith.constant 0 : i32
    %c0_i32_2 = arith.constant 0 : i32
    return %c0_i32, %c0_i32_0, %c0_i32_1 : i32, i32, i32
  }
  func.func @transform_3(%arg0: i32) -> (i32, i32, i32) {
    %c0_i32 = arith.constant 0 : i32
    %c0_i32_0 = arith.constant 0 : i32
    %c0_i32_1 = arith.constant 0 : i32
    return %arg0, %c0_i32, %c0_i32_0 : i32, i32, i32
  }
  func.func @transform_4(%arg0: i32) -> (i32, i32, i32) {
    %c0_i32 = arith.constant 0 : i32
    %c0_i32_0 = arith.constant 0 : i32
    %c0_i32_1 = arith.constant 0 : i32
    return %arg0, %c0_i32, %c0_i32_0 : i32, i32, i32
  }
}

</mosaic_0001>

<bundles_post_ra>
// kernel: sem_graph_conv.1
= control target key start
LH: loop header
LB: loop body
LE: loop exit
PB: predicated region body
PF: predicated region fallthrough
CT: control target
= control target key end

     0   :  { %vm51_vm0 = vcmask 1043456   ;;  %vm44_vm1 = vcmask 31744   ;;  %vm19_vm2 = vcmask 64512   ;;  %s438_s0 = inlined_call_operand.vmem [shape: f32[8,8], index: 0, kind: input, shape index: {}]   ;;  %s439_s1 = inlined_call_operand.vmem [shape: f32[4,64], index: 1, kind: input, shape index: {}]   ;;  %s440_s2 = inlined_call_operand.vmem [shape: f32[1,1,32], index: 2, kind: input, shape index: {}]   ;;  %s441_s3 = inlined_call_operand.vmem [shape: f32[2,8,4], index: 3, kind: input, shape index: {}]   ;;  %s442_s4 = inlined_call_operand.hbm [shape: f32[2,8,32], index: 4, kind: output, shape index: {}]  }
   0x1   :  { %v43_v0 = vld [vmem:[%s439_s1] sm:$0xf]  ;;  %v42_v3 = vld [vmem:[%s441_s3 + $0x8] sm:$0xff] }
   0x2   :  { %v41_v1 = vld [vmem:[%s441_s3] sm:$0xff]  ;;  %326 = vmatprep.subr.msk.mxu0 %vm51_vm0, %v43_v0 }
   0x3   :  { %v18_v2 = vld [vmem:[%s438_s0] sm:$0xff]  ;;  %328 = vmatprep.mubr.msk.f32.mxu0 %vm44_vm1, %v41_v1 }
   0x4   :  { %9 = vsyncpa [#allocation3], 0  ;;  %327 = vmatpush3.msk.msra.mxu0 %vm51_vm0, %v43_v0  ;;  %v20_v4 = vsel %vm19_vm2, %v18_v2, -inf  ;;  %v375_v10 = vmov 0.0   ;;  %vm376_vm3 = vmmov 0   ;;  %s377_s0 = smov 96   ;;  %v31_v14 = vlaneseq }
   0x5   :  { %21 = vmax.xlane.f32.xlu0 %v20_v4  ;;  %329 = vmatmul.mubr.msk.f32.vlgmr.msra.gmra.mrb[0].mxu0 %vm44_vm1, %v42_v3  ;;  %v318_v27 = vld [vmem:[%s440_s2] ss:$0 sm:$0xff]  ;;  %vm294_vm5 = vcmask 261120   ;;  %s378_s23 = smov [#allocation2]  }
   0x6   :  { %331 = vmatprep.subr.mxu1 %v375_v10  ;;  %336 = vmatprep.subr.mxu0 %v375_v10  ;;  %v32_v15 = vshrl.u32 %v31_v14, 7  ;;  %v34_v16 = vand.u32 127, %v31_v14  ;;  %s302_s24 = sshll.u32 %s378_s23, 4  ;;  %s303_s24 = int_to_ptr.vmem [resolvable:$true] %s302_s24 }
   0x7   :  { %333 = vmatprep.mubr.msk.f32.mxu1 %vm376_vm3, %v375_v10  ;;  %338 = vmatprep.mubr.msk.f32.mxu0 %vm376_vm3, %v375_v10  ;;  %s351_s25 = scalar_lea.vmem %s303_s24, 256  ;;  %p356_p1 = scmp.lt.s32.totalorder %s303_s24, %s303_s24 }
   0x8   :  { %vm35_vm4 = vcmp.eq.s32.totalorder %v32_v15, %v34_v16  ;;  %p352_p0 = scmp.ne.s32.totalorder %s303_s24, %s351_s25  ;;  %p357_p2 = scmp.lt.s32.totalorder %s351_s25, %s351_s25 }
   0xa   :  { %p358_p3 = por %p357_p2, %p356_p1 }
   0xc   :  { %p359_p4 = pnand %p358_p3, %p352_p0 }
  0x92   :  { %v22_v5 = vpop.xlane.xlu0 %21 }
  0x93   :  { %v23_v6 = vsub.f32 %v18_v2, %v22_v5 }
  0x95   :  { %v24_v7 = vmul.f32 1.442695, %v23_v6 }
  0x97   :  { %347 = vpow2.f32 %v24_v7 }
  0xa1   :  { %v348_v8 = vpop.eup %347 }
  0xa2   :  { %v26_v9 = vsel %vm19_vm2, %v348_v8, 0.0 }
  0xa3   :  { %27 = vadd.xlane.f32.xlu0 %v26_v9 }
  0xd8   :  { %v330_v11 = vpop.f32.mrb[0].mxu0 }
  0xd9   :  { %v121_v12 = vpop.f32.mrb[1].mxu0 }
  0xda   :  { %131 = vrot.lane.b32.xlu1 %v121_v12, %s377_s0 }
  0xde   :  { %208 = vrot.lane.b32.xlu1 %v330_v11, %s377_s0 }
 0x130   :  { %v28_v13 = vpop.xlane.xlu0 %27 }
 0x131   :  { %349 = vrcp.f32 %v28_v13 }
 0x13b   :  { %v350_v17 = vpop.eup %349 }
 0x13c   :  { %v30_v18 = vmul.f32 %v350_v17, %v348_v8 }
 0x13e   :  { %v37_v19 = vsel %vm35_vm4, %v30_v18, 0.0  ;;  %v36_v22 = vsel %vm35_vm4, 0.0, %v30_v18 }
 0x13f   :  { %v38_v20 = vsel %vm19_vm2, %v37_v19, 0.0 }
 0x140   :  { %39 = vadd.xlane.f32.xlu0 %v38_v20 }
 0x14c   :  { %v132_v21 = vpop.permute.xlu1 %131 }
 0x14d   :  { %332 = vmatpush3.msra.mxu1 %v132_v21 }
 0x14e   :  { %334 = vmatmul.mubr.msk.f32.vlgmr.msra.gmra.mrb[0].mxu1 %vm19_vm2, %v36_v22 }
 0x150   :  { %v209_v23 = vpop.permute.xlu1 %208 }
 0x151   :  { %337 = vmatpush3.msra.mxu0 %v209_v23 }
 0x152   :  { %339 = vmatmul.mubr.msk.f32.vlgmr.msra.gmra.mrb[2].mxu0 %vm19_vm2, %v36_v22 }
 0x1cd   :  { %v40_v24 = vpop.xlane.xlu0 %39 }
 0x1ce   :  { %v281_v25 = vmul.f32 %v121_v12, %v40_v24  ;;  %v282_v30 = vmul.f32 %v330_v11, %v40_v24 }
 0x221   :  { %v203_v26 = vpop.f32.mrb[0].mxu1 }
 0x222   :  { %v283_v28 = vadd.f32 %v281_v25, %v203_v26  ;;  %v335_v29 = vpop.f32.mrb[1].mxu1 }
 0x224   :  { %v292_v31 = vadd.f32 %v318_v27, %v283_v28 }
 0x225   :  { %v277_v32 = vpop.f32.mrb[2].mxu0 }
 0x226   :  { %295 = vst.msk [vmem:[#allocation2] sm:$0xff] %vm294_vm5, %v292_v31  ;;  %v284_v33 = vadd.f32 %v282_v30, %v277_v32  ;;  %v340_v34 = vpop.f32.mrb[3].mxu0 }
 0x228   :  { %v293_v35 = vadd.f32 %v318_v27, %v284_v33 }
 0x22a   :  { %296 = vst.msk [vmem:[#allocation2 + $0x8] sm:$0xff] %vm294_vm5, %v293_v35 }
 0x22b   :  { %362 = shalt.err (!%p359_p4)
}
 0x22c   :  { %s363_s27 = scalar_lea.hbm %s442_s4, 256 }
 0x22d   :  { %p364_p5 = scmp.ne.s32.totalorder %s442_s4, %s363_s27  ;;  %p367_p6 = scmp.lt.u32.totalorder %s363_s27, %s442_s4 }
 0x22f   :  { %p369_p7 = pnand %p367_p6, %p364_p5 }
 0x231   :  { %372 = shalt.err (!%p369_p7)
}
 0x232   :  { %s379_s6 = smov 128   ;;  %s380_s7 = smov 8  }
 0x233   :  { %308 = dma.vmem_to_hbm [thread:$0]  %s303_s24, 256, %s442_s4, [#allocation3], %s379_s6, %s379_s6, %s380_s7  }
 0x234   :  { %373 = dma.done.wait [#allocation3], 256  }
 0x235   :  { %374 = vsyncadd [#allocation3], 4294967040 }
 0x236   :  { %312 = vsyncpa [#allocation3], 1 }

</bundles_post_ra>
